<compile_context>
chip_gen: v7x
topology: tpu7x:2x2x1
jax: 0.10.0
libtpu: 0.0.40
codegen_flags: <defaults>
</compile_context>

<pallas_src>
import jax
import jax.numpy as jnp
from jax.experimental import pallas as pl
from jax.experimental.pallas import tpu as pltpu


# ----------------------------------------------------------------------------
# Kernels
# ----------------------------------------------------------------------------
def _make_kernel(tk, x_resident, fuse_linear):
    """Builds the aggregation(+linear) kernel for the chosen configuration."""

    def _x_tile(x_ref, k):
        if x_resident:
            # X/Y is fully resident in VMEM; take the k-th (tk, cols) slab.
            start = pl.multiple_of(k * tk, tk)
            return x_ref[pl.ds(start, tk), :]
        return x_ref[...]

    if fuse_linear:
        def kernel(adj_ref, x_ref, w_ref, b_ref, out_ref, acc_ref):
            k = pl.program_id(1)

            @pl.when(k == 0)
            def _init():
                acc_ref[...] = jnp.zeros_like(acc_ref)

            # int8 adjacency tile -> bf16 (VPU filler, hidden under the DMA),
            # bf16 x bf16 MXU matmul with f32 accumulation.
            a = adj_ref[...].astype(jnp.float32).astype(jnp.bfloat16)
            acc_ref[...] += jnp.dot(a, _x_tile(x_ref, k),
                                    preferred_element_type=jnp.float32)

            @pl.when(k == pl.num_programs(1) - 1)
            def _finalize():
                # Linear epilogue once per row tile: bf16 MXU path.
                h = acc_ref[...].astype(jnp.bfloat16)
                out_ref[...] = (jnp.dot(h, w_ref[...],
                                        preferred_element_type=jnp.float32)
                                + b_ref[...]).astype(out_ref.dtype)

        return kernel

    def kernel(adj_ref, y_ref, b_ref, out_ref, acc_ref):
        # Pre-multiplied path: Y = X @ W.T was computed by XLA; kernel does
        # A @ Y + b with a narrower (tm, Fo_pad) accumulator.
        k = pl.program_id(1)

        @pl.when(k == 0)
        def _init():
            acc_ref[...] = jnp.zeros_like(acc_ref)

        a = adj_ref[...].astype(jnp.float32).astype(jnp.bfloat16)
        acc_ref[...] += jnp.dot(a, _x_tile(y_ref, k),
                                preferred_element_type=jnp.float32)

        @pl.when(k == pl.num_programs(1) - 1)
        def _finalize():
            out_ref[...] = (acc_ref[...] + b_ref[...]).astype(out_ref.dtype)

    return kernel


# ----------------------------------------------------------------------------
# Wrapper helpers
# ----------------------------------------------------------------------------
def _round_up(x, m):
    return ((x + m - 1) // m) * m


def _vmem_capacity_bytes():
    """Chip-aware physical VMEM capacity, with a conservative fallback."""
    try:
        info = pltpu.get_tpu_info()
        cap = getattr(info, "vmem_capacity_bytes", None)
        if cap:
            return int(cap)
    except Exception:
        pass
    return 64 << 20  # conservative (v7x per-TC VMEM)


def _vmem_estimate(tile, n_pad, kcols, fi_pad, fo_pad, x_resident, fuse_linear):
    """Conservative per-call VMEM estimate (everything counted double-buffered)."""
    acc_cols = fi_pad if fuse_linear else fo_pad
    b = 2 * tile * tile                                      # int8 A tiles
    b += 2 * (n_pad if x_resident else tile) * kcols * 2     # bf16 X / Y
    if fuse_linear:
        b += 2 * fi_pad * fo_pad * 2                         # bf16 W^T (resident)
    b += 2 * fo_pad * 4                                      # bias
    b += 2 * tile * fo_pad * 4                               # f32 output tile
    b += tile * acc_cols * 4                                 # f32 accumulator
    return b


def _choose_tile(N, kcols, fi_pad, fo_pad, x_resident, fuse_linear, budget):
    n_pad128 = _round_up(N, 128)
    for t in (2048, 1024, 512, 256, 128):
        if t > n_pad128:
            continue
        n_pad = _round_up(N, t)
        if _vmem_estimate(t, n_pad, kcols, fi_pad, fo_pad,
                          x_resident, fuse_linear) <= budget:
            return t
    return 128


# ----------------------------------------------------------------------------
# Public entry point
# ----------------------------------------------------------------------------
def gcn_layer_forward(adj, feature, weight, bias, *, tile=None):
    """GCNLayer.forward on a dense graph: (adj @ feature) @ weight.T + bias.

    adj     : (N, N) dense binary adjacency, row = destination, col = source
    feature : (N, in_feats)
    weight  : (out_feats, in_feats)   (PyTorch nn.Linear layout)
    bias    : (out_feats,)
    returns : (N, out_feats) float32
    """
    N = adj.shape[0]
    Fi = feature.shape[-1]
    Fo = weight.shape[0]

    Fi_pad = _round_up(Fi, 128)
    Fo_pad = _round_up(Fo, 128)

    # Associativity choice: fuse the linear layer into the kernel unless the
    # output width is (after padding) narrower than the input width, in which
    # case precompute Y = X @ W.T and aggregate that instead.
    fuse_linear = Fo_pad >= Fi_pad
    kcols = Fi_pad if fuse_linear else Fo_pad

    cap = _vmem_capacity_bytes()
    budget = int(0.60 * cap)

    # Keep X / Y fully resident when small (avoids re-streaming it once per
    # row tile and frees DMA descriptors for the adjacency tiles).
    x_resident = _round_up(N, 128) * kcols * 2 <= min(16 << 20, cap // 4)

    if tile is None:
        tile = _choose_tile(N, kcols, Fi_pad, Fo_pad, x_resident,
                            fuse_linear, budget)
    assert tile >= 128 and tile % 128 == 0, "tile must be a multiple of 128"
    tm = tk = tile
    N_pad = _round_up(N, tile)
    # Re-check residency with the final padded size.
    x_resident = x_resident and (N_pad * kcols * 2 <= min(16 << 20, cap // 4))

    # ---- operand preparation (int8 A is exact for 0/1 edges) ----------------
    adj_p = jnp.pad(adj.astype(jnp.int8), ((0, N_pad - N), (0, N_pad - N)))
    bias_p = jnp.pad(bias.astype(jnp.float32), (0, Fo_pad - Fo)).reshape(1, Fo_pad)

    if fuse_linear:
        x_p = jnp.pad(feature.astype(jnp.bfloat16),
                      ((0, N_pad - N), (0, Fi_pad - Fi)))
        w_p = jnp.pad(weight.T.astype(jnp.bfloat16),
                      ((0, Fi_pad - Fi), (0, Fo_pad - Fo)))       # (Fi_pad, Fo_pad)
    else:
        y = jnp.dot(feature.astype(jnp.float32), weight.T.astype(jnp.float32),
                    precision=jax.lax.Precision.HIGHEST)          # (N, Fo)
        x_p = jnp.pad(y.astype(jnp.bfloat16),
                      ((0, N_pad - N), (0, Fo_pad - Fo)))
        w_p = None

    grid = (N_pad // tm, N_pad // tk)

    # ---- BlockSpecs ----------------------------------------------------------
    adj_spec = pl.BlockSpec((tm, tk), lambda i, k: (i, k))
    if x_resident:
        x_spec = pl.BlockSpec((N_pad, kcols), lambda i, k: (0, 0))  # resident
    else:
        x_spec = pl.BlockSpec((tk, kcols), lambda i, k: (k, 0))     # streamed
    b_spec = pl.BlockSpec((1, Fo_pad), lambda i, k: (0, 0))
    out_spec = pl.BlockSpec((tm, Fo_pad), lambda i, k: (i, 0))

    if fuse_linear:
        w_spec = pl.BlockSpec((Fi_pad, Fo_pad), lambda i, k: (0, 0))
        in_specs = [adj_spec, x_spec, w_spec, b_spec]
        operands = (adj_p, x_p, w_p, bias_p)
        acc_cols = Fi_pad
    else:
        in_specs = [adj_spec, x_spec, b_spec]
        operands = (adj_p, x_p, bias_p)
        acc_cols = Fo_pad

    # ---- compiler params / cost ---------------------------------------------
    vmem_est = _vmem_estimate(tile, N_pad, kcols, Fi_pad, Fo_pad,
                              x_resident, fuse_linear)
    vmem_limit = int(min(max(int(1.25 * vmem_est), 32 << 20), int(0.85 * cap)))

    x_bytes = x_p.size * 2 if x_resident else (N_pad // tm) * x_p.size * 2
    flops = 2 * N_pad * N_pad * kcols
    bytes_accessed = adj_p.size + x_bytes + bias_p.size * 4 + N_pad * Fo_pad * 4
    if fuse_linear:
        flops += 2 * N_pad * Fi_pad * Fo_pad
        bytes_accessed += w_p.size * 2
    cost = pl.CostEstimate(flops=int(flops), transcendentals=0,
                           bytes_accessed=int(bytes_accessed))

    kernel = _make_kernel(tk, x_resident, fuse_linear)

    out_p = pl.pallas_call(
        kernel,
        out_shape=jax.ShapeDtypeStruct((N_pad, Fo_pad), jnp.float32),
        grid_spec=pltpu.PrefetchScalarGridSpec(
            num_scalar_prefetch=0,
            grid=grid,
            in_specs=in_specs,
            out_specs=out_spec,
            scratch_shapes=[pltpu.VMEM((tm, acc_cols), jnp.float32)],
        ),
        compiler_params=pltpu.CompilerParams(
            dimension_semantics=("parallel", "arbitrary"),
            vmem_limit_bytes=vmem_limit),
        cost_estimate=cost,
    )(*operands)

    return out_p[:N, :Fo]


# ----------------------------------------------------------------------------
# References
# ----------------------------------------------------------------------------
def _reference_f32(adj, feature, weight, bias):
    """Exact f32 PyTorch semantics: (A @ X) @ W.T + b."""
    h = jnp.dot(adj.astype(jnp.float32), feature.astype(jnp.float32),
                precision=jax.lax.Precision.HIGHEST)
    return (jnp.dot(h, weight.T.astype(jnp.float32),
                    precision=jax.lax.Precision.HIGHEST)
            + bias.astype(jnp.float32))


def _reference_quantized(adj, feature, weight, bias):
    """Mirrors the kernel's quantization policy (int8 A exact, bf16 X/W/acc)."""
    Fi, Fo = feature.shape[-1], weight.shape[0]
    fuse = _round_up(Fo, 128) >= _round_up(Fi, 128)
    a = adj.astype(jnp.float32)
    if fuse:
        x = feature.astype(jnp.bfloat16).astype(jnp.float32)
        h = jnp.dot(a, x, precision=jax.lax.Precision.HIGHEST)
        h = h.astype(jnp.bfloat16).astype(jnp.float32)
        w = weight.T.astype(jnp.bfloat16).astype(jnp.float32)
        return (jnp.dot(h, w, precision=jax.lax.Precision.HIGHEST)
                + bias.astype(jnp.float32))
    y = jnp.dot(feature.astype(jnp.float32), weight.T.astype(jnp.float32),
                precision=jax.lax.Precision.HIGHEST)
    y = y.astype(jnp.bfloat16).astype(jnp.float32)
    return (jnp.dot(a, y, precision=jax.lax.Precision.HIGHEST)
            + bias.astype(jnp.float32))


# ----------------------------------------------------------------------------
# Self-test
# ----------------------------------------------------------------------------
if __name__ == "__main__":
    key = jax.random.PRNGKey(0)
    k_adj, k_feat, k_w, k_b, k_feat2, k_w2, k_b2 = jax.random.split(key, 7)

    N, in_feats, out_feats = 256, 48, 96

    adj = (jax.random.uniform(k_adj, (N, N)) < 0.3).astype(jnp.float32)
    feature = jax.random.normal(k_feat, (N, in_feats), dtype=jnp.float32)
    bound = 1.0 / (in_feats ** 0.5)
    weight = jax.random.uniform(k_w, (out_feats, in_feats),
                                minval=-bound, maxval=bound, dtype=jnp.float32)
    bias = jax.random.uniform(k_b, (out_feats,),
                              minval=-bound, maxval=bound, dtype=jnp.float32)

    ref_q = _reference_quantized(adj, feature, weight, bias)
    ref_f = _reference_f32(adj, feature, weight, bias)

    # (1) default config: small-problem fast path -> single-tile 1x1 grid.
    out_a = jax.block_until_ready(gcn_layer_forward(adj, feature, weight, bias))
    # (2) forced 128 tiles: multi-step K accumulation + resident-X dynamic slicing.
    out_b = jax.block_until_ready(
        gcn_layer_forward(adj, feature, weight, bias, tile=128))

    for out in (out_a, out_b):
        assert out.shape == (N, out_feats)
        assert jnp.allclose(out, ref_q, atol=5e-2, rtol=1e-2), (
            float(jnp.max(jnp.abs(out - ref_q))))
        assert jnp.allclose(out, ref_f, atol=5e-1, rtol=5e-2), (
            float(jnp.max(jnp.abs(out - ref_f))))

    # (3) Fo_pad < Fi_pad -> pre-multiplied associativity path (A @ (X W^T) + b).
    in2, out2 = 200, 64
    feat2 = jax.random.normal(k_feat2, (N, in2), dtype=jnp.float32)
    bnd2 = 1.0 / (in2 ** 0.5)
    w2 = jax.random.uniform(k_w2, (out2, in2),
                            minval=-bnd2, maxval=bnd2, dtype=jnp.float32)
    bias2 = jax.random.uniform(k_b2, (out2,),
                               minval=-bnd2, maxval=bnd2, dtype=jnp.float32)

    out_c = jax.block_until_ready(gcn_layer_forward(adj, feat2, w2, bias2))
    assert out_c.shape == (N, out2)
    assert jnp.allclose(out_c, _reference_quantized(adj, feat2, w2, bias2),
                        atol=5e-2, rtol=1e-2)
    assert jnp.allclose(out_c, _reference_f32(adj, feat2, w2, bias2),
                        atol=5e-1, rtol=5e-2)

    print("KERNEL_OK")
</pallas_src>

<mosaic_0001>
module attributes {stable_mosaic.version = 11 : i64} {
  func.func @kernel(%arg0: i32, %arg1: i32, %arg2: memref<256x256xi8, #tpu.memory_space<vmem>>, %arg3: memref<256x128xbf16, #tpu.memory_space<vmem>>, %arg4: memref<128x128xbf16, #tpu.memory_space<vmem>>, %arg5: memref<1x128xf32, #tpu.memory_space<vmem>>, %arg6: memref<256x128xf32, #tpu.memory_space<vmem>>, %arg7: memref<256x128xf32, #tpu.memory_space<vmem>>) attributes {dimension_semantics = [#tpu.dimension_semantics<parallel>, #tpu.dimension_semantics<arbitrary>], iteration_bounds = array<i64: 1, 1>, scalar_prefetch = 0 : i64, scratch_operands = 1 : i64, tpu.core_type = #tpu.core_type<tc>, window_params = [{transform_indices = @transform_0, window_bounds = array<i64: 256, 256>}, {pipeline_mode = #tpu.pipeline_mode<synchronous>, transform_indices = @transform_1, window_bounds = array<i64: 256, 128>}, {pipeline_mode = #tpu.pipeline_mode<synchronous>, transform_indices = @transform_2, window_bounds = array<i64: 128, 128>}, {pipeline_mode = #tpu.pipeline_mode<synchronous>, transform_indices = @transform_3, window_bounds = array<i64: 1, 128>}, {transform_indices = @transform_4, window_bounds = array<i64: 256, 128>}]} {
    %c0_i32 = arith.constant 0 : i32
    %0 = arith.cmpi eq, %arg1, %c0_i32 : i32
    %1 = arith.extui %0 : i1 to i32
    %c0_i32_0 = arith.constant 0 : i32
    %2 = arith.cmpi ne, %1, %c0_i32_0 : i32
    scf.if %2 {
      %cst_9 = arith.constant 0.000000e+00 : f32
      %17 = vector.broadcast %cst_9 : f32 to vector<256x128xf32>
      %c0_10 = arith.constant 0 : index
      %c0_11 = arith.constant 0 : index
      %18 = vector.load %arg7[%c0_10, %c0_11] : memref<256x128xf32, #tpu.memory_space<vmem>>, vector<256x128xf32>
      tpu.vector_store %arg7[%c0_10, %c0_11], %17 {strides = array<i32>} : memref<256x128xf32, #tpu.memory_space<vmem>>, vector<256x128xf32>,
    } else {
    }
    %c0 = arith.constant 0 : index
    %c0_1 = arith.constant 0 : index
    %3 = vector.load %arg2[%c0, %c0_1] : memref<256x256xi8, #tpu.memory_space<vmem>>, vector<256x256xi8>
    %4 = arith.sitofp %3 : vector<256x256xi8> to vector<256x256xf32>
    %5 = arith.truncf %4 : vector<256x256xf32> to vector<256x256xbf16>
    %c0_2 = arith.constant 0 : index
    %c0_3 = arith.constant 0 : index
    %6 = vector.load %arg7[%c0_2, %c0_3] : memref<256x128xf32, #tpu.memory_space<vmem>>, vector<256x128xf32>
    %c256_i32 = arith.constant 256 : i32
    %7 = arith.muli %arg1, %c256_i32 : i32
    %8 = tpu.assume_multiple %7, 256 : i32
    %9 = arith.index_cast %8 : i32 to index
    %c0_4 = arith.constant 0 : index
    %10 = vector.load %arg3[%9, %c0_4] : memref<256x128xbf16, #tpu.memory_space<vmem>>, vector<256x128xbf16>
    %cst = arith.constant dense<0.000000e+00> : vector<256x128xf32>
    %11 = tpu.matmul %5, %10, %cst {dimension_numbers = #tpu.dot_dimension_numbers<[1], [0], [0], [1], [0, 0, 1, 1], [], []>} : vector<256x256xbf16>, vector<256x128xbf16>, vector<256x128xf32> -> vector<256x128xf32>
    %12 = arith.addf %6, %11 : vector<256x128xf32>
    %c0_5 = arith.constant 0 : index
    %c0_6 = arith.constant 0 : index
    %13 = vector.load %arg7[%c0_5, %c0_6] : memref<256x128xf32, #tpu.memory_space<vmem>>, vector<256x128xf32>
    tpu.vector_store %arg7[%c0_5, %c0_6], %12 {strides = array<i32>} : memref<256x128xf32, #tpu.memory_space<vmem>>, vector<256x128xf32>,
    %c0_i32_7 = arith.constant 0 : i32
    %14 = arith.cmpi eq, %arg1, %c0_i32_7 : i32
    %15 = arith.extui %14 : i1 to i32
    %c0_i32_8 = arith.constant 0 : i32
    %16 = arith.cmpi ne, %15, %c0_i32_8 : i32
    scf.if %16 {
      %c0_9 = arith.constant 0 : index
      %c0_10 = arith.constant 0 : index
      %17 = vector.load %arg7[%c0_9, %c0_10] : memref<256x128xf32, #tpu.memory_space<vmem>>, vector<256x128xf32>
      %18 = arith.truncf %17 : vector<256x128xf32> to vector<256x128xbf16>
      %c0_11 = arith.constant 0 : index
      %c0_12 = arith.constant 0 : index
      %19 = vector.load %arg4[%c0_11, %c0_12] : memref<128x128xbf16, #tpu.memory_space<vmem>>, vector<128x128xbf16>
      %cst_13 = arith.constant dense<0.000000e+00> : vector<256x128xf32>
      %20 = tpu.matmul %18, %19, %cst_13 {dimension_numbers = #tpu.dot_dimension_numbers<[1], [0], [0], [1], [0, 0, 1, 1], [], []>} : vector<256x128xbf16>, vector<128x128xbf16>, vector<256x128xf32> -> vector<256x128xf32>
      %c0_14 = arith.constant 0 : index
      %c0_15 = arith.constant 0 : index
      %21 = vector.load %arg5[%c0_14, %c0_15] : memref<1x128xf32, #tpu.memory_space<vmem>>, vector<1x128xf32>
      %22 = vector.broadcast %21 : vector<1x128xf32> to vector<256x128xf32>
      %23 = arith.addf %20, %22 : vector<256x128xf32>
      %c0_16 = arith.constant 0 : index
      %c0_17 = arith.constant 0 : index
      %24 = vector.load %arg6[%c0_16, %c0_17] : memref<256x128xf32, #tpu.memory_space<vmem>>, vector<256x128xf32>
      tpu.vector_store %arg6[%c0_16, %c0_17], %23 {strides = array<i32>} : memref<256x128xf32, #tpu.memory_space<vmem>>, vector<256x128xf32>,
    } else {
    }
    return
  }
  func.func @transform_0(%arg0: i32, %arg1: i32) -> (i32, i32) {
    %c0_i32 = arith.constant 0 : i32
    return %arg0, %arg1 : i32, i32
  }
  func.func @transform_1(%arg0: i32, %arg1: i32) -> (i32, i32) {
    %c0_i32 = arith.constant 0 : i32
    %c0_i32_0 = arith.constant 0 : i32
    %c0_i32_1 = arith.constant 0 : i32
    return %c0_i32, %c0_i32_0 : i32, i32
  }
  func.func @transform_2(%arg0: i32, %arg1: i32) -> (i32, i32) {
    %c0_i32 = arith.constant 0 : i32
    %c0_i32_0 = arith.constant 0 : i32
    %c0_i32_1 = arith.constant 0 : i32
    return %c0_i32, %c0_i32_0 : i32, i32
  }
  func.func @transform_3(%arg0: i32, %arg1: i32) -> (i32, i32) {
    %c0_i32 = arith.constant 0 : i32
    %c0_i32_0 = arith.constant 0 : i32
    %c0_i32_1 = arith.constant 0 : i32
    return %c0_i32, %c0_i32_0 : i32, i32
  }
  func.func @transform_4(%arg0: i32, %arg1: i32) -> (i32, i32) {
    %c0_i32 = arith.constant 0 : i32
    %c0_i32_0 = arith.constant 0 : i32
    return %arg0, %c0_i32 : i32, i32
  }
}

</mosaic_0001>

<bundles_post_ra>
// kernel: tpu_custom_call.1
= control target key start
LH: loop header
LB: loop body
LE: loop exit
PB: predicated region body
PF: predicated region fallthrough
CT: control target
= control target key end

     0   :  { %9 = vsyncpa [#allocation4], 0  ;;  %s1384_s0 = inlined_call_operand.hbm [shape: s8[256,256], index: 0, kind: input, shape index: {}]   ;;  %s1385_s1 = inlined_call_operand.hbm [shape: bf16[256,128], index: 1, kind: input, shape index: {}]   ;;  %s1386_s2 = inlined_call_operand.hbm [shape: bf16[128,128], index: 2, kind: input, shape index: {}]   ;;  %s1387_s3 = inlined_call_operand.vmem [shape: f32[1,128], index: 3, kind: input, shape index: {}]   ;;  %s1388_s4 = inlined_call_operand.hbm [shape: f32[256,128], index: 4, kind: output, shape index: {}]  }
   0x1   :  { %10 = vsyncpa [#allocation7], 0 }
   0x2   :  { %11 = vsyncpa [#allocation5], 0  ;;  %s1222_s15 = smov [#allocation6]   ;;  %s1128_s19 = scalar_lea.hbm %s1385_s1, 2048 }
   0x3   :  { %s29_s16 = sshll.u32 %s1222_s15, 4  ;;  %p1129_p0 = scmp.ne.s32.totalorder %s1385_s1, %s1128_s19  ;;  %s30_s16 = int_to_ptr.vmem [resolvable:$true] %s29_s16 }
   0x4   :  { %p1132_p1 = scmp.lt.u32.totalorder %s1128_s19, %s1385_s1 }
   0x6   :  { %p1134_p2 = pnand %p1132_p1, %p1129_p0 }
   0x8   :  { %1137 = shalt.err (!%p1134_p2)
}
   0x9   :  { %s1138_s24 = scalar_lea.vmem %s30_s16, 2048  ;;  %p1143_p4 = scmp.lt.s32.totalorder %s30_s16, %s30_s16 }
   0xa   :  { %p1139_p3 = scmp.ne.s32.totalorder %s30_s16, %s1138_s24  ;;  %p1144_p5 = scmp.lt.s32.totalorder %s1138_s24, %s1138_s24 }
   0xc   :  { %p1145_p6 = por %p1144_p5, %p1143_p4 }
   0xe   :  { %p1146_p7 = pnand %p1145_p6, %p1139_p3 }
  0x10   :  { %1149 = shalt.err (!%p1146_p7)
}
  0x11   :  { %s1223_s25 = smov 64   ;;  %s1224_s26 = smov 4  }
  0x12   :  { %35 = dma.hbm_to_vmem [thread:$0]  %s1385_s1, 2048, %s30_s16, [#allocation7], %s1223_s25, %s1223_s25, %s1224_s26  }
  0x13   :  { %s1225_s29 = smov [#allocation3]   ;;  %s1150_s7 = scalar_lea.hbm %s1384_s0, 2048 }
  0x14   :  { %s17_s30 = sshll.u32 %s1225_s29, 4  ;;  %p1151_p8 = scmp.ne.s32.totalorder %s1384_s0, %s1150_s7  ;;  %s18_s30 = int_to_ptr.vmem [resolvable:$true] %s17_s30 }
  0x15   :  { %p1154_p9 = scmp.lt.u32.totalorder %s1150_s7, %s1384_s0 }
  0x17   :  { %p1156_p10 = pnand %p1154_p9, %p1151_p8 }
  0x19   :  { %1159 = shalt.err (!%p1156_p10)
}
  0x1a   :  { %s1160_s12 = scalar_lea.vmem %s18_s30, 2048  ;;  %p1165_p12 = scmp.lt.s32.totalorder %s18_s30, %s18_s30 }
  0x1b   :  { %p1161_p11 = scmp.ne.s32.totalorder %s18_s30, %s1160_s12  ;;  %p1166_p13 = scmp.lt.s32.totalorder %s1160_s12, %s1160_s12 }
  0x1d   :  { %p1167_p0 = por %p1166_p13, %p1165_p12 }
  0x1f   :  { %p1168_p1 = pnand %p1167_p0, %p1161_p11 }
  0x21   :  { %1171 = shalt.err (!%p1168_p1)
}
  0x22   :  { %s1226_s1 = smov 256   ;;  %s1227_s13 = smov 16  }
  0x23   :  { %23 = dma.hbm_to_vmem [thread:$0]  %s1384_s0, 2048, %s18_s30, [#allocation4], %s1226_s1, %s1226_s1, %s1227_s13  }
  0x24   :  { %s1228_s16 = smov [#allocation8]   ;;  %s1172_s20 = scalar_lea.hbm %s1386_s2, 1024 }
  0x25   :  { %s41_s17 = sshll.u32 %s1228_s16, 4  ;;  %p1173_p2 = scmp.ne.s32.totalorder %s1386_s2, %s1172_s20  ;;  %s42_s17 = int_to_ptr.vmem [resolvable:$true] %s41_s17 }
  0x26   :  { %p1176_p3 = scmp.lt.u32.totalorder %s1172_s20, %s1386_s2 }
  0x28   :  { %p1178_p4 = pnand %p1176_p3, %p1173_p2 }
  0x2a   :  { %1181 = shalt.err (!%p1178_p4)
}
  0x2b   :  { %s1182_s27 = scalar_lea.vmem %s42_s17, 1024  ;;  %p1187_p6 = scmp.lt.s32.totalorder %s42_s17, %s42_s17 }
  0x2c   :  { %p1183_p5 = scmp.ne.s32.totalorder %s42_s17, %s1182_s27  ;;  %p1188_p7 = scmp.lt.s32.totalorder %s1182_s27, %s1182_s27 }
  0x2e   :  { %p1189_p8 = por %p1188_p7, %p1187_p6 }
  0x30   :  { %p1190_p9 = pnand %p1189_p8, %p1183_p5 }
  0x32   :  { %1193 = shalt.err (!%p1190_p9)
}
  0x33   :  { %47 = dma.hbm_to_vmem [thread:$0]  %s1386_s2, 1024, %s42_s17, [#allocation7], %s1223_s25, %s1223_s25, %s1224_s26  }
  0x34   :  { %1216 = dma.done.wait [#allocation4], 2048  }
  0x35   :  { %1217 = vsyncadd [#allocation4], 4294965248 }
  0x36   :  { %1218 = dma.done.wait [#allocation7], 3072  }
  0x37   :  { %1219 = vsyncadd [#allocation7], 4294964224  ;;  %v1104_v0 = vld [vmem:[#allocation6 + $0x40] sm:$0xff]   ;;  %v1106_v2 = vld [vmem:[#allocation6 + $0x48] sm:$0xff]  }
  0x38   :  { %v1105_v1 = vld [vmem:[#allocation6] sm:$0xff]   ;;  %894 = vmatprep.subr.bf16.mxu0 %v1104_v0  ;;  %1078 = vmatprep.subr.bf16.mxu1 %v1104_v0  ;;  %v1107_v3 = vld [vmem:[#allocation6 + $0x8] sm:$0xff]   ;;  %v1108_v4 = vld [vmem:[#allocation6 + $0x50] sm:$0xff]  }
  0x39   :  { %895 = vmatpush3.bf16.msra.mxu0 %v1105_v1  ;;  %1086 = vmatpush3.bf16.msra.mxu1 %v1105_v1  ;;  %v1109_v5 = vld [vmem:[#allocation6 + $0x10] sm:$0xff]   ;;  %v1110_v6 = vld [vmem:[#allocation6 + $0x58] sm:$0xff]   ;;  %v1112_v8 = vld [vmem:[#allocation6 + $0x60] sm:$0xff]  }
  0x3a   :  { %896 = vmatprep.subr.bf16.mxu0 %v1106_v2  ;;  %1079 = vmatprep.subr.bf16.mxu1 %v1106_v2  ;;  %v1111_v7 = vld [vmem:[#allocation6 + $0x18] sm:$0xff]   ;;  %v1113_v9 = vld [vmem:[#allocation6 + $0x20] sm:$0xff]   ;;  %v1114_v10 = vld [vmem:[#allocation6 + $0x68] sm:$0xff]  }
  0x3b   :  { %v97_v11 = vld [vmem:[#allocation3 + $0x8] sm:$0xff]  ;;  %v1116_v15 = vld [vmem:[#allocation6 + $0x70] sm:$0xff]   ;;  %v1118_v18 = vld [vmem:[#allocation6 + $0x78] sm:$0xff]  }
  0x3c   :  { %v113_v12 = vunpack.c.l.s8.bf16 %v97_v11  ;;  %v1115_v13 = vld [vmem:[#allocation6 + $0x28] sm:$0xff]   ;;  %v1117_v17 = vld [vmem:[#allocation6 + $0x30] sm:$0xff]   ;;  %v1119_v19 = vld [vmem:[#allocation6 + $0x38] sm:$0xff]   ;;  %v115_v24 = vunpack.c.h.s8.bf16 %v97_v11 }
  0x3d   :  { %897 = vmatpush3.bf16.msra.mxu0 %v1107_v3  ;;  %1087 = vmatpush3.bf16.msra.mxu1 %v1107_v3  ;;  %v109_v14 = vld [vmem:[#allocation3 + $0x68] sm:$0xff]  ;;  %v96_v20 = vld [vmem:[#allocation3] sm:$0xff]  ;;  %v99_v28 = vld [vmem:[#allocation3 + $0x18] sm:$0xff] }
  0x3e   :  { %898 = vmatprep.subr.bf16.mxu0 %v1108_v4  ;;  %1080 = vmatprep.subr.bf16.mxu1 %v1108_v4  ;;  %v137_v16 = vunpack.c.l.s8.bf16 %v109_v14  ;;  %v108_v21 = vld [vmem:[#allocation3 + $0x60] sm:$0xff]  ;;  %v112_v23 = vunpack.c.l.s8.bf16 %v96_v20  ;;  %v139_v26 = vunpack.c.h.s8.bf16 %v109_v14  ;;  %v1121_v27 = vld [vmem:[#allocation8 + $0x8] sm:$0xff]   ;;  %v111_v29 = vld [vmem:[#allocation3 + $0x78] sm:$0xff]  ;;  %v114_v31 = vunpack.c.h.s8.bf16 %v96_v20 }
  0x3f   :  { %341 = vmatprep.mubr.bf16.mxu0 %v113_v12  ;;  %v1120_v22 = vld [vmem:[#allocation8] sm:$0xff]   ;;  %v136_v25 = vunpack.c.l.s8.bf16 %v108_v21  ;;  %v1122_v30 = vld [vmem:[#allocation8 + $0x10] sm:$0xff]   ;;  %v117_v32 = vunpack.c.l.s8.bf16 %v99_v28  ;;  %v138_v33 = vunpack.c.h.s8.bf16 %v108_v21  ;;  %v141_v34 = vunpack.c.l.s8.bf16 %v111_v29  ;;  %v1123_v35 = vld [vmem:[#allocation8 + $0x18] sm:$0xff]  }
  0x40   :  { %437 = vmatprep.mubr.bf16.mxu1 %v137_v16  ;;  %v98_v36 = vld [vmem:[#allocation3 + $0x10] sm:$0xff]  ;;  %v119_v39 = vunpack.c.h.s8.bf16 %v99_v28  ;;  %v143_v41 = vunpack.c.h.s8.bf16 %v111_v29  ;;  %v101_v42 = vld [vmem:[#allocation3 + $0x28] sm:$0xff]  ;;  %v100_v46 = vld [vmem:[#allocation3 + $0x20] sm:$0xff] }
  0x41   :  { %899 = vmatpush3.bf16.msra.mxu0 %v1109_v5  ;;  %1088 = vmatpush3.bf16.msra.mxu1 %v1109_v5  ;;  %v110_v37 = vld [vmem:[#allocation3 + $0x70] sm:$0xff]  ;;  %v116_v38 = vunpack.c.l.s8.bf16 %v98_v36  ;;  %v118_v43 = vunpack.c.h.s8.bf16 %v98_v36  ;;  %v121_v44 = vunpack.c.l.s8.bf16 %v101_v42  ;;  %v120_v47 = vunpack.c.l.s8.bf16 %v100_v46  ;;  %v103_v49 = vld [vmem:[#allocation3 + $0x38] sm:$0xff]  ;;  %v105_v55 = vld [vmem:[#allocation3 + $0x48] sm:$0xff] }
  0x42   :  { %900 = vmatprep.subr.bf16.mxu0 %v1110_v6  ;;  %1081 = vmatprep.subr.bf16.mxu1 %v1110_v6  ;;  %v140_v40 = vunpack.c.l.s8.bf16 %v110_v37  ;;  %v142_v45 = vunpack.c.h.s8.bf16 %v110_v37  ;;  %v123_v48 = vunpack.c.h.s8.bf16 %v101_v42  ;;  %v122_v50 = vunpack.c.h.s8.bf16 %v100_v46  ;;  %v102_v52 = vld [vmem:[#allocation3 + $0x30] sm:$0xff]  ;;  %v104_v58 = vld [vmem:[#allocation3 + $0x40] sm:$0xff]  ;;  %v107_v61 = vld [vmem:[#allocation3 + $0x58] sm:$0xff] }
  0x43   :  { %v125_v51 = vunpack.c.l.s8.bf16 %v103_v49  ;;  %v124_v53 = vunpack.c.l.s8.bf16 %v102_v52  ;;  %v127_v54 = vunpack.c.h.s8.bf16 %v103_v49  ;;  %v126_v56 = vunpack.c.h.s8.bf16 %v102_v52  ;;  %v106_v0 = vld [vmem:[#allocation3 + $0x50] sm:$0xff]  ;;  %v1124_v3 = vld [vmem:[#allocation8 + $0x20] sm:$0xff]   ;;  %v1125_v5 = vld [vmem:[#allocation8 + $0x28] sm:$0xff]  }
  0x44   :  { %v129_v57 = vunpack.c.l.s8.bf16 %v105_v55  ;;  %v128_v59 = vunpack.c.l.s8.bf16 %v104_v58  ;;  %v131_v60 = vunpack.c.h.s8.bf16 %v105_v55  ;;  %v130_v62 = vunpack.c.h.s8.bf16 %v104_v58  ;;  %v1126_v6 = vld [vmem:[#allocation8 + $0x30] sm:$0xff]  }
  0x45   :  { %901 = vmatpush3.bf16.msra.mxu0 %v1111_v7  ;;  %1089 = vmatpush3.bf16.msra.mxu1 %v1111_v7  ;;  %v133_v63 = vunpack.c.l.s8.bf16 %v107_v61  ;;  %v132_v1 = vunpack.c.l.s8.bf16 %v106_v0  ;;  %v135_v2 = vunpack.c.h.s8.bf16 %v107_v61  ;;  %v134_v4 = vunpack.c.h.s8.bf16 %v106_v0  ;;  %v1127_v7 = vld [vmem:[#allocation8 + $0x38] sm:$0xff]  }
  0x46   :  { %902 = vmatprep.subr.bf16.mxu0 %v1112_v8  ;;  %1082 = vmatprep.subr.bf16.mxu1 %v1112_v8 }
  0x49   :  { %903 = vmatpush3.bf16.msra.mxu0 %v1113_v9  ;;  %1090 = vmatpush3.bf16.msra.mxu1 %v1113_v9 }
  0x4a   :  { %904 = vmatprep.subr.bf16.mxu0 %v1114_v10  ;;  %1083 = vmatprep.subr.bf16.mxu1 %v1114_v10 }
  0x4d   :  { %905 = vmatpush3.bf16.msra.mxu0 %v1115_v13  ;;  %1091 = vmatpush3.bf16.msra.mxu1 %v1115_v13 }
  0x4e   :  { %906 = vmatprep.subr.bf16.mxu0 %v1116_v15  ;;  %1084 = vmatprep.subr.bf16.mxu1 %v1116_v15 }
  0x51   :  { %907 = vmatpush3.bf16.msra.mxu0 %v1117_v17  ;;  %1092 = vmatpush3.bf16.msra.mxu1 %v1117_v17 }
  0x52   :  { %908 = vmatprep.subr.bf16.mxu0 %v1118_v18  ;;  %1085 = vmatprep.subr.bf16.mxu1 %v1118_v18 }
  0x55   :  { %909 = vmatpush3.bf16.msra.mxu0 %v1119_v19  ;;  %1093 = vmatpush3.bf16.msra.mxu1 %v1119_v19 }
  0x56   :  { %1030 = vmatprep.subr.bf16.mxu1 %v1120_v22 }
  0x58   :  { %342 = vmatmul.mubr.bf16.vlgmr.msra.gmra.mrb[0].mxu0 %v112_v23  ;;  %438 = vmatmul.mubr.bf16.vlgmr.msra.gmra.mrb[0].mxu1 %v136_v25 }
  0x59   :  { %349 = vmatprep.mubr.bf16.mxu0 %v115_v24  ;;  %445 = vmatprep.mubr.bf16.mxu1 %v139_v26 }
  0x5a   :  { %1031 = vmatpush3.bf16.msra.mxu1 %v1120_v22 }
  0x5b   :  { %1032 = vmatprep.subr.bf16.mxu1 %v1121_v27 }
  0x5e   :  { %1033 = vmatpush3.bf16.msra.mxu1 %v1121_v27 }
  0x5f   :  { %1034 = vmatprep.subr.bf16.mxu1 %v1122_v30 }
  0x60   :  { %350 = vmatmul.mubr.bf16.gmra.mrb[4].mxu0 %v114_v31  ;;  %446 = vmatmul.mubr.bf16.gmra.mrb[4].mxu1 %v138_v33 }
  0x61   :  { %357 = vmatprep.mubr.bf16.mxu0 %v117_v32  ;;  %453 = vmatprep.mubr.bf16.mxu1 %v141_v34 }
  0x62   :  { %1035 = vmatpush3.bf16.msra.mxu1 %v1122_v30 }
  0x63   :  { %1036 = vmatprep.subr.bf16.mxu1 %v1123_v35 }
  0x66   :  { %1037 = vmatpush3.bf16.msra.mxu1 %v1123_v35 }
  0x67   :  { %1038 = vmatprep.subr.bf16.mxu1 %v1124_v3 }
  0x68   :  { %358 = vmatmul.mubr.bf16.gmra.mrb[8].mxu0 %v116_v38  ;;  %454 = vmatmul.mubr.bf16.gmra.mrb[8].mxu1 %v140_v40 }
  0x69   :  { %365 = vmatprep.mubr.bf16.mxu0 %v119_v39  ;;  %461 = vmatprep.mubr.bf16.mxu1 %v143_v41 }
  0x6a   :  { %1039 = vmatpush3.bf16.msra.mxu1 %v1124_v3 }
  0x6b   :  { %1040 = vmatprep.subr.bf16.mxu1 %v1125_v5 }
  0x6e   :  { %1041 = vmatpush3.bf16.msra.mxu1 %v1125_v5 }
  0x6f   :  { %1042 = vmatprep.subr.bf16.mxu1 %v1126_v6 }
  0x70   :  { %366 = vmatmul.mubr.bf16.gmra.mrb[12].mxu0 %v118_v43  ;;  %462 = vmatmul.mubr.bf16.gmra.mrb[12].mxu1 %v142_v45 }
  0x71   :  { %373 = vmatprep.mubr.bf16.mxu0 %v121_v44 }
  0x72   :  { %1043 = vmatpush3.bf16.msra.mxu1 %v1126_v6 }
  0x73   :  { %1044 = vmatprep.subr.bf16.mxu1 %v1127_v7 }
  0x76   :  { %1045 = vmatpush3.bf16.msra.mxu1 %v1127_v7 }
  0x78   :  { %374 = vmatmul.mubr.bf16.gmra.mrb[16].mxu0 %v120_v47 }
  0x79   :  { %381 = vmatprep.mubr.bf16.mxu0 %v123_v48 }
  0x80   :  { %382 = vmatmul.mubr.bf16.gmra.mrb[20].mxu0 %v122_v50 }
  0x81   :  { %389 = vmatprep.mubr.bf16.mxu0 %v125_v51 }
  0x88   :  { %390 = vmatmul.mubr.bf16.gmra.mrb[24].mxu0 %v124_v53 }
  0x89   :  { %397 = vmatprep.mubr.bf16.mxu0 %v127_v54 }
  0x90   :  { %398 = vmatmul.mubr.bf16.gmra.mrb[28].mxu0 %v126_v56 }
  0x91   :  { %405 = vmatprep.mubr.bf16.mxu0 %v129_v57 }
  0x98   :  { %406 = vmatmul.mubr.bf16.gmra.mrb[32].mxu0 %v128_v59 }
  0x99   :  { %413 = vmatprep.mubr.bf16.mxu0 %v131_v60 }
  0xa0   :  { %414 = vmatmul.mubr.bf16.gmra.mrb[36].mxu0 %v130_v62 }
  0xa1   :  { %421 = vmatprep.mubr.bf16.mxu0 %v133_v63 }
  0xa8   :  { %422 = vmatmul.mubr.bf16.gmra.mrb[40].mxu0 %v132_v1 }
  0xa9   :  { %429 = vmatprep.mubr.bf16.mxu0 %v135_v2 }
  0xb0   :  { %430 = vmatmul.mubr.bf16.gmra.mrb[44].mxu0 %v134_v4 }
 0x12b   :  { %v910_v8 = vpop.f32.mrb[0].mxu0  ;;  %v982_v10 = vpop.f32.mrb[0].mxu1 }
 0x12c   :  { %v911_v9 = vpop.f32.mrb[1].mxu0  ;;  %v983_v13 = vpop.f32.mrb[1].mxu1 }
 0x12d   :  { %v912_v11 = vadd.f32 %v911_v9, %v910_v8  ;;  %v913_v12 = vpop.f32.mrb[2].mxu0  ;;  %v1299_v15 = vadd.f32 %v983_v13, %v982_v10  ;;  %v985_v16 = vpop.f32.mrb[2].mxu1 }
 0x12e   :  { %v914_v14 = vpop.f32.mrb[3].mxu0  ;;  %v986_v18 = vpop.f32.mrb[3].mxu1 }
 0x12f   :  { %v915_v17 = vadd.f32 %v914_v14, %v913_v12  ;;  %v1301_v19 = vadd.f32 %v986_v18, %v985_v16 }
 0x131   :  { %v569_v20 = vpack.c.bf16 %v915_v17, %v912_v11  ;;  %v581_v21 = vpack.c.bf16 %v1301_v19, %v1299_v15 }
 0x133   :  { %v916_v22 = vpop.f32.mrb[4].mxu0  ;;  %1046 = vmatprep.mubr.bf16.mxu1 %v569_v20  ;;  %v988_v24 = vpop.f32.mrb[4].mxu1 }
 0x134   :  { %v917_v23 = vpop.f32.mrb[5].mxu0  ;;  %v989_v27 = vpop.f32.mrb[5].mxu1 }
 0x135   :  { %v918_v25 = vadd.f32 %v917_v23, %v916_v22  ;;  %v919_v26 = vpop.f32.mrb[6].mxu0  ;;  %v1305_v29 = vadd.f32 %v989_v27, %v988_v24  ;;  %v991_v30 = vpop.f32.mrb[6].mxu1 }
 0x136   :  { %v920_v28 = vpop.f32.mrb[7].mxu0  ;;  %v992_v32 = vpop.f32.mrb[7].mxu1 }
 0x137   :  { %v921_v31 = vadd.f32 %v920_v28, %v919_v26  ;;  %v1307_v33 = vadd.f32 %v992_v32, %v991_v30 }
 0x139   :  { %v570_v34 = vpack.c.bf16 %v921_v31, %v918_v25  ;;  %v582_v35 = vpack.c.bf16 %v1307_v33, %v1305_v29 }
 0x13b   :  { %v922_v36 = vpop.f32.mrb[8].mxu0  ;;  %1047 = vmatmul.mubr.bf16.vlgmr.msra.gmra.mrb[16].mxu1 %v570_v34  ;;  %v994_v38 = vpop.f32.mrb[8].mxu1 }
 0x13c   :  { %v923_v37 = vpop.f32.mrb[9].mxu0  ;;  %v995_v41 = vpop.f32.mrb[9].mxu1 }
 0x13d   :  { %v924_v39 = vadd.f32 %v923_v37, %v922_v36  ;;  %v925_v40 = vpop.f32.mrb[10].mxu0  ;;  %v1311_v43 = vadd.f32 %v995_v41, %v994_v38  ;;  %v997_v44 = vpop.f32.mrb[10].mxu1 }
 0x13e   :  { %v926_v42 = vpop.f32.mrb[11].mxu0  ;;  %v998_v46 = vpop.f32.mrb[11].mxu1 }
 0x13f   :  { %v927_v45 = vadd.f32 %v926_v42, %v925_v40  ;;  %v1313_v47 = vadd.f32 %v998_v46, %v997_v44 }
 0x141   :  { %v571_v48 = vpack.c.bf16 %v927_v45, %v924_v39  ;;  %v583_v49 = vpack.c.bf16 %v1313_v47, %v1311_v43 }
 0x143   :  { %v928_v50 = vpop.f32.mrb[12].mxu0  ;;  %1050 = vmatprep.mubr.bf16.mxu1 %v571_v48  ;;  %v1000_v52 = vpop.f32.mrb[12].mxu1 }
 0x144   :  { %v929_v51 = vpop.f32.mrb[13].mxu0  ;;  %v1001_v55 = vpop.f32.mrb[13].mxu1 }
 0x145   :  { %v930_v53 = vadd.f32 %v929_v51, %v928_v50  ;;  %v931_v54 = vpop.f32.mrb[14].mxu0  ;;  %v1317_v57 = vadd.f32 %v1001_v55, %v1000_v52  ;;  %v1003_v58 = vpop.f32.mrb[14].mxu1 }
 0x146   :  { %v932_v56 = vpop.f32.mrb[15].mxu0  ;;  %v1004_v60 = vpop.f32.mrb[15].mxu1 }
 0x147   :  { %v933_v59 = vadd.f32 %v932_v56, %v931_v54  ;;  %v1319_v61 = vadd.f32 %v1004_v60, %v1003_v58 }
 0x149   :  { %v572_v62 = vpack.c.bf16 %v933_v59, %v930_v53  ;;  %v584_v63 = vpack.c.bf16 %v1319_v61, %v1317_v57 }
 0x14b   :  { %v934_v0 = vpop.f32.mrb[16].mxu0  ;;  %1051 = vmatmul.mubr.bf16.gmra.mrb[20].mxu1 %v572_v62 }
 0x14c   :  { %v935_v1 = vpop.f32.mrb[17].mxu0 }
 0x14d   :  { %v936_v2 = vadd.f32 %v935_v1, %v934_v0  ;;  %v937_v3 = vpop.f32.mrb[18].mxu0 }
 0x14e   :  { %v938_v4 = vpop.f32.mrb[19].mxu0 }
 0x14f   :  { %v939_v5 = vadd.f32 %v938_v4, %v937_v3  ;;  %v1338_v4 = vld [vmem:[%s1387_s3] ss:$0 sm:$0xff]  ;;  %s1229_s3 = smov [#allocation9]  }
 0x150   :  { %s854_s26 = sshll.u32 %s1229_s3, 4  ;;  %s855_s26 = int_to_ptr.vmem [resolvable:$true] %s854_s26 }
 0x151   :  { %v573_v6 = vpack.c.bf16 %v939_v5, %v936_v2  ;;  %s1194_s29 = scalar_lea.vmem %s855_s26, 4096  ;;  %p1199_p11 = scmp.lt.s32.totalorder %s855_s26, %s855_s26 }
 0x152   :  { %p1195_p10 = scmp.ne.s32.totalorder %s855_s26, %s1194_s29  ;;  %p1200_p12 = scmp.lt.s32.totalorder %s1194_s29, %s1194_s29 }
 0x153   :  { %v940_v7 = vpop.f32.mrb[20].mxu0  ;;  %1054 = vmatprep.mubr.bf16.mxu1 %v573_v6 }
 0x154   :  { %v941_v8 = vpop.f32.mrb[21].mxu0  ;;  %p1201_p13 = por %p1200_p12, %p1199_p11 }
 0x155   :  { %v942_v9 = vadd.f32 %v941_v8, %v940_v7  ;;  %v943_v10 = vpop.f32.mrb[22].mxu0 }
 0x156   :  { %v944_v11 = vpop.f32.mrb[23].mxu0  ;;  %p1202_p0 = pnand %p1201_p13, %p1195_p10 }
 0x157   :  { %v945_v12 = vadd.f32 %v944_v11, %v943_v10 }
 0x159   :  { %v574_v13 = vpack.c.bf16 %v945_v12, %v942_v9 }
 0x15b   :  { %v946_v14 = vpop.f32.mrb[24].mxu0  ;;  %1055 = vmatmul.mubr.bf16.gmra.mrb[24].mxu1 %v574_v13 }
 0x15c   :  { %v947_v16 = vpop.f32.mrb[25].mxu0 }
 0x15d   :  { %v948_v17 = vadd.f32 %v947_v16, %v946_v14  ;;  %v949_v18 = vpop.f32.mrb[26].mxu0 }
 0x15e   :  { %v950_v20 = vpop.f32.mrb[27].mxu0 }
 0x15f   :  { %v951_v22 = vadd.f32 %v950_v20, %v949_v18 }
 0x161   :  { %v575_v23 = vpack.c.bf16 %v951_v22, %v948_v17 }
 0x163   :  { %v952_v24 = vpop.f32.mrb[28].mxu0  ;;  %1058 = vmatprep.mubr.bf16.mxu1 %v575_v23 }
 0x164   :  { %v953_v25 = vpop.f32.mrb[29].mxu0 }
 0x165   :  { %v954_v26 = vadd.f32 %v953_v25, %v952_v24  ;;  %v955_v27 = vpop.f32.mrb[30].mxu0 }
 0x166   :  { %v956_v28 = vpop.f32.mrb[31].mxu0 }
 0x167   :  { %v957_v30 = vadd.f32 %v956_v28, %v955_v27 }
 0x169   :  { %v576_v31 = vpack.c.bf16 %v957_v30, %v954_v26 }
 0x16b   :  { %v958_v32 = vpop.f32.mrb[32].mxu0  ;;  %1059 = vmatmul.mubr.bf16.gmra.mrb[28].mxu1 %v576_v31 }
 0x16c   :  { %v959_v34 = vpop.f32.mrb[33].mxu0 }
 0x16d   :  { %v960_v36 = vadd.f32 %v959_v34, %v958_v32  ;;  %v961_v37 = vpop.f32.mrb[34].mxu0 }
 0x16e   :  { %v962_v38 = vpop.f32.mrb[35].mxu0 }
 0x16f   :  { %v963_v39 = vadd.f32 %v962_v38, %v961_v37 }
 0x171   :  { %v577_v40 = vpack.c.bf16 %v963_v39, %v960_v36 }
 0x173   :  { %v964_v41 = vpop.f32.mrb[36].mxu0  ;;  %1062 = vmatprep.mubr.bf16.mxu1 %v577_v40 }
 0x174   :  { %v965_v42 = vpop.f32.mrb[37].mxu0 }
 0x175   :  { %v966_v44 = vadd.f32 %v965_v42, %v964_v41  ;;  %v967_v45 = vpop.f32.mrb[38].mxu0 }
 0x176   :  { %v968_v46 = vpop.f32.mrb[39].mxu0 }
 0x177   :  { %v969_v48 = vadd.f32 %v968_v46, %v967_v45 }
 0x179   :  { %v578_v50 = vpack.c.bf16 %v969_v48, %v966_v44 }
 0x17b   :  { %v970_v51 = vpop.f32.mrb[40].mxu0  ;;  %1063 = vmatmul.mubr.bf16.gmra.mrb[32].mxu1 %v578_v50 }
 0x17c   :  { %v971_v52 = vpop.f32.mrb[41].mxu0 }
 0x17d   :  { %v972_v53 = vadd.f32 %v971_v52, %v970_v51  ;;  %v973_v54 = vpop.f32.mrb[42].mxu0 }
 0x17e   :  { %v974_v55 = vpop.f32.mrb[43].mxu0 }
 0x17f   :  { %v975_v56 = vadd.f32 %v974_v55, %v973_v54 }
 0x181   :  { %v579_v58 = vpack.c.bf16 %v975_v56, %v972_v53 }
 0x183   :  { %v976_v59 = vpop.f32.mrb[44].mxu0  ;;  %1066 = vmatprep.mubr.bf16.mxu1 %v579_v58 }
 0x184   :  { %v977_v60 = vpop.f32.mrb[45].mxu0 }
 0x185   :  { %v978_v62 = vadd.f32 %v977_v60, %v976_v59  ;;  %v979_v0 = vpop.f32.mrb[46].mxu0 }
 0x186   :  { %v980_v1 = vpop.f32.mrb[47].mxu0 }
 0x187   :  { %v981_v2 = vadd.f32 %v980_v1, %v979_v0 }
 0x189   :  { %v580_v3 = vpack.c.bf16 %v981_v2, %v978_v62 }
 0x18b   :  { %1067 = vmatmul.mubr.bf16.gmra.mrb[36].mxu1 %v580_v3 }
 0x18c   :  { %1070 = vmatprep.mubr.bf16.mxu1 %v581_v21 }
 0x193   :  { %1071 = vmatmul.mubr.bf16.gmra.mrb[40].mxu1 %v582_v35 }
 0x194   :  { %1074 = vmatprep.mubr.bf16.mxu1 %v583_v49 }
 0x19b   :  { %1075 = vmatmul.mubr.bf16.gmra.mrb[44].mxu1 %v584_v63 }
 0x20e   :  { %v1048_v5 = vpop.f32.mrb[16].mxu1 }
 0x20f   :  { %v699_v15 = vadd.f32 %v1048_v5, %v1338_v4  ;;  %v690_v19 = vpop.f32.mrb[17].mxu1 }
 0x210   :  { %v691_v21 = vadd.f32 %v1338_v4, %v690_v19  ;;  %v1049_v29 = vpop.f32.mrb[18].mxu1 }
 0x211   :  { %819 = vst [vmem:[#allocation9 + $0x10] sm:$0xff] %v699_v15  ;;  %v702_v33 = vadd.f32 %v1049_v29, %v1338_v4  ;;  %v693_v35 = vpop.f32.mrb[19].mxu1 }
 0x212   :  { %817 = vst [vmem:[#allocation9] sm:$0xff] %v691_v21  ;;  %v694_v43 = vadd.f32 %v1338_v4, %v693_v35 }
 0x213   :  { %820 = vst [vmem:[#allocation9 + $0x18] sm:$0xff] %v702_v33 }
 0x214   :  { %818 = vst [vmem:[#allocation9 + $0x8] sm:$0xff] %v694_v43 }
 0x21e   :  { %v1052_v47 = vpop.f32.mrb[20].mxu1 }
 0x21f   :  { %v715_v49 = vadd.f32 %v1052_v47, %v1338_v4  ;;  %v706_v57 = vpop.f32.mrb[21].mxu1 }
 0x220   :  { %v707_v61 = vadd.f32 %v1338_v4, %v706_v57  ;;  %v1053_v63 = vpop.f32.mrb[22].mxu1 }
 0x221   :  { %823 = vst [vmem:[#allocation9 + $0x30] sm:$0xff] %v715_v49  ;;  %v718_v6 = vadd.f32 %v1053_v63, %v1338_v4  ;;  %v709_v7 = vpop.f32.mrb[23].mxu1 }
 0x222   :  { %821 = vst [vmem:[#allocation9 + $0x20] sm:$0xff] %v707_v61  ;;  %v710_v8 = vadd.f32 %v1338_v4, %v709_v7 }
 0x223   :  { %824 = vst [vmem:[#allocation9 + $0x38] sm:$0xff] %v718_v6 }
 0x224   :  { %822 = vst [vmem:[#allocation9 + $0x28] sm:$0xff] %v710_v8 }
 0x22e   :  { %v1056_v9 = vpop.f32.mrb[24].mxu1 }
 0x22f   :  { %v731_v10 = vadd.f32 %v1056_v9, %v1338_v4  ;;  %v722_v11 = vpop.f32.mrb[25].mxu1 }
 0x230   :  { %v723_v12 = vadd.f32 %v1338_v4, %v722_v11  ;;  %v1057_v13 = vpop.f32.mrb[26].mxu1 }
 0x231   :  { %827 = vst [vmem:[#allocation9 + $0x50] sm:$0xff] %v731_v10  ;;  %v734_v14 = vadd.f32 %v1057_v13, %v1338_v4  ;;  %v725_v16 = vpop.f32.mrb[27].mxu1 }
 0x232   :  { %825 = vst [vmem:[#allocation9 + $0x40] sm:$0xff] %v723_v12  ;;  %v726_v17 = vadd.f32 %v1338_v4, %v725_v16 }
 0x233   :  { %828 = vst [vmem:[#allocation9 + $0x58] sm:$0xff] %v734_v14 }
 0x234   :  { %826 = vst [vmem:[#allocation9 + $0x48] sm:$0xff] %v726_v17 }
 0x23e   :  { %v1060_v18 = vpop.f32.mrb[28].mxu1 }
 0x23f   :  { %v747_v20 = vadd.f32 %v1060_v18, %v1338_v4  ;;  %v738_v22 = vpop.f32.mrb[29].mxu1 }
 0x240   :  { %v739_v23 = vadd.f32 %v1338_v4, %v738_v22  ;;  %v1061_v24 = vpop.f32.mrb[30].mxu1 }
 0x241   :  { %831 = vst [vmem:[#allocation9 + $0x70] sm:$0xff] %v747_v20  ;;  %v750_v25 = vadd.f32 %v1061_v24, %v1338_v4  ;;  %v741_v26 = vpop.f32.mrb[31].mxu1 }
 0x242   :  { %829 = vst [vmem:[#allocation9 + $0x60] sm:$0xff] %v739_v23  ;;  %v742_v27 = vadd.f32 %v1338_v4, %v741_v26 }
 0x243   :  { %832 = vst [vmem:[#allocation9 + $0x78] sm:$0xff] %v750_v25 }
 0x244   :  { %830 = vst [vmem:[#allocation9 + $0x68] sm:$0xff] %v742_v27 }
 0x24e   :  { %v1064_v28 = vpop.f32.mrb[32].mxu1 }
 0x24f   :  { %v763_v30 = vadd.f32 %v1064_v28, %v1338_v4  ;;  %v754_v31 = vpop.f32.mrb[33].mxu1 }
 0x250   :  { %v755_v32 = vadd.f32 %v1338_v4, %v754_v31  ;;  %v1065_v34 = vpop.f32.mrb[34].mxu1 }
 0x251   :  { %835 = vst [vmem:[#allocation9 + $0x90] sm:$0xff] %v763_v30  ;;  %v766_v36 = vadd.f32 %v1065_v34, %v1338_v4  ;;  %v757_v37 = vpop.f32.mrb[35].mxu1 }
 0x252   :  { %833 = vst [vmem:[#allocation9 + $0x80] sm:$0xff] %v755_v32  ;;  %v758_v38 = vadd.f32 %v1338_v4, %v757_v37 }
 0x253   :  { %836 = vst [vmem:[#allocation9 + $0x98] sm:$0xff] %v766_v36 }
 0x254   :  { %834 = vst [vmem:[#allocation9 + $0x88] sm:$0xff] %v758_v38 }
 0x25e   :  { %v1068_v39 = vpop.f32.mrb[36].mxu1 }
 0x25f   :  { %v779_v40 = vadd.f32 %v1068_v39, %v1338_v4  ;;  %v770_v41 = vpop.f32.mrb[37].mxu1 }
 0x260   :  { %v771_v42 = vadd.f32 %v1338_v4, %v770_v41  ;;  %v1069_v44 = vpop.f32.mrb[38].mxu1 }
 0x261   :  { %839 = vst [vmem:[#allocation9 + $0xb0] sm:$0xff] %v779_v40  ;;  %v782_v45 = vadd.f32 %v1069_v44, %v1338_v4  ;;  %v773_v46 = vpop.f32.mrb[39].mxu1 }
 0x262   :  { %837 = vst [vmem:[#allocation9 + $0xa0] sm:$0xff] %v771_v42  ;;  %v774_v48 = vadd.f32 %v1338_v4, %v773_v46 }
 0x263   :  { %840 = vst [vmem:[#allocation9 + $0xb8] sm:$0xff] %v782_v45 }
 0x264   :  { %838 = vst [vmem:[#allocation9 + $0xa8] sm:$0xff] %v774_v48 }
 0x266   :  { %v1072_v50 = vpop.f32.mrb[40].mxu1 }
 0x267   :  { %v795_v51 = vadd.f32 %v1072_v50, %v1338_v4  ;;  %v786_v52 = vpop.f32.mrb[41].mxu1 }
 0x268   :  { %v787_v53 = vadd.f32 %v1338_v4, %v786_v52  ;;  %v1073_v54 = vpop.f32.mrb[42].mxu1 }
 0x269   :  { %843 = vst [vmem:[#allocation9 + $0xd0] sm:$0xff] %v795_v51  ;;  %v798_v55 = vadd.f32 %v1073_v54, %v1338_v4  ;;  %v789_v56 = vpop.f32.mrb[43].mxu1 }
 0x26a   :  { %841 = vst [vmem:[#allocation9 + $0xc0] sm:$0xff] %v787_v53  ;;  %v790_v58 = vadd.f32 %v1338_v4, %v789_v56 }
 0x26b   :  { %844 = vst [vmem:[#allocation9 + $0xd8] sm:$0xff] %v798_v55 }
 0x26c   :  { %842 = vst [vmem:[#allocation9 + $0xc8] sm:$0xff] %v790_v58 }
 0x26e   :  { %v1076_v59 = vpop.f32.mrb[44].mxu1 }
 0x26f   :  { %v811_v60 = vadd.f32 %v1076_v59, %v1338_v4  ;;  %v802_v62 = vpop.f32.mrb[45].mxu1 }
 0x270   :  { %v803_v0 = vadd.f32 %v1338_v4, %v802_v62  ;;  %v1077_v1 = vpop.f32.mrb[46].mxu1 }
 0x271   :  { %847 = vst [vmem:[#allocation9 + $0xf0] sm:$0xff] %v811_v60  ;;  %v814_v2 = vadd.f32 %v1077_v1, %v1338_v4  ;;  %v805_v3 = vpop.f32.mrb[47].mxu1 }
 0x272   :  { %845 = vst [vmem:[#allocation9 + $0xe0] sm:$0xff] %v803_v0  ;;  %v806_v5 = vadd.f32 %v1338_v4, %v805_v3 }
 0x273   :  { %848 = vst [vmem:[#allocation9 + $0xf8] sm:$0xff] %v814_v2 }
 0x274   :  { %846 = vst [vmem:[#allocation9 + $0xe8] sm:$0xff] %v806_v5 }
 0x275   :  { %1205 = shalt.err (!%p1202_p0)
}
 0x276   :  { %s1206_s6 = scalar_lea.hbm %s1388_s4, 4096 }
 0x277   :  { %p1207_p1 = scmp.ne.s32.totalorder %s1388_s4, %s1206_s6  ;;  %p1210_p2 = scmp.lt.u32.totalorder %s1206_s6, %s1388_s4 }
 0x279   :  { %p1212_p3 = pnand %p1210_p2, %p1207_p1 }
 0x27b   :  { %1215 = shalt.err (!%p1212_p3)
}
 0x27c   :  { %s1230_s11 = smov 128   ;;  %s1231_s12 = smov 8  }
 0x27d   :  { %860 = dma.vmem_to_hbm [thread:$0]  %s855_s26, 4096, %s1388_s4, [#allocation5], %s1230_s11, %s1230_s11, %s1231_s12  }
 0x27e   :  { %1220 = dma.done.wait [#allocation5], 4096  }
 0x27f   :  { %1221 = vsyncadd [#allocation5], 4294963200 }
 0x280   :  { %864 = vsyncpa [#allocation4], 1 }
 0x281   :  { %865 = vsyncpa [#allocation7], 1 }
 0x282   :  { %866 = vsyncpa [#allocation5], 1 }

</bundles_post_ra>
